<compile_context>
chip_gen: v5e
topology: v5e:2x2
jax: 0.10.0
libtpu: 0.0.40
codegen_flags: <defaults>
</compile_context>

<pallas_src>
import functools

import numpy as np

import jax
import jax.numpy as jnp
from jax import lax
from jax.experimental import pallas as pl
from jax.experimental.pallas import tpu as pltpu


# ---------------------------------------------------------------------------
# Kernel
# ---------------------------------------------------------------------------
def _space_to_depth_kernel(x_ref, sel_ref, o_ref, *, bs, hbwb, mm_dtype, precision):
    """x_ref:   (Gb, C, H*W)            dense input tile
       sel_ref: (H*W, H*W)              constant permutation matrix
       o_ref:   (Gb, bs, bs, C, Hb*Wb)  dense output tile"""
    gb = x_ref.shape[0]

    def body(g, carry):
        # Per-image dense load; keep it inside the loop (small vreg footprint).
        v = x_ref[g].astype(mm_dtype)                         # (C, H*W)
        # One fused one-hot matmul does the whole spatial permutation.
        y = jnp.dot(v, sel_ref[...],
                    precision=precision,
                    preferred_element_type=jnp.float32)       # (C, bs*bs*Hb*Wb)
        for hi in range(bs):
            for wi in range(bs):
                off = (hi * bs + wi) * hbwb
                o_ref[g, hi, wi, :, :] = y[:, off:off + hbwb].astype(o_ref.dtype)
        return carry

    lax.fori_loop(0, gb, body, 0)


# ---------------------------------------------------------------------------
# Host-side helpers
# ---------------------------------------------------------------------------
def _build_selection_matrix(bs, H, W):
    """Permutation matrix sel[h*W+w, ((hi*bs+wi)*Hb+hb)*Wb+wb] = 1
    iff h == hb*bs+hi and w == wb*bs+wi.  Built with numpy -> baked constant."""
    Hb, Wb = H // bs, W // bs
    j = np.arange(H * W)
    h, w = j // W, j % W
    hb, hi = h // bs, h % bs
    wb, wi = w // bs, w % bs
    k = ((hi * bs + wi) * Hb + hb) * Wb + wb
    sel = np.zeros((H * W, H * W), dtype=np.float32)
    sel[j, k] = 1.0
    return sel


def _round_up(x, m):
    return -(-x // m) * m


def _sublane(itemsize):
    return {4: 8, 2: 16, 1: 32}.get(itemsize, 8)


def _largest_divisor_leq(n, cap):
    cap = max(1, min(n, int(cap)))
    for d in range(cap, 0, -1):
        if n % d == 0:
            return d
    return 1


def _vmem_limit_bytes():
    """Generation-gated scoped-VMEM limit (v5e/v6e: 128 MiB, v7x: 64 MiB/TC)."""
    cap = 64 * 1024 * 1024  # conservative default = v7x per-TensorCore VMEM
    try:
        info = pltpu.get_tpu_info()
        cap = int(getattr(info, "vmem_capacity_bytes", cap) or cap)
    except Exception:
        pass
    return max(16 * 1024 * 1024, min(3 * cap // 4, 64 * 1024 * 1024))


def _choose_batch_block(B, C, HW, HbWb, bs, x_itemsize, mm_itemsize, budget):
    """Largest divisor of B whose (double-buffered) tiles + sel + temporaries
    fit the budget; capped so B >= 2 always yields >= 2 parallel grid steps."""
    sub_x = _sublane(x_itemsize)
    sub_mm = _sublane(mm_itemsize)
    # Padded VMEM bytes per batch element for the pipelined in/out blocks.
    in_b = _round_up(C, sub_x) * _round_up(HW, 128) * x_itemsize
    out_b = bs * bs * _round_up(C, sub_x) * _round_up(HbWb, 128) * x_itemsize
    per_b = 2 * (in_b + out_b)  # x2: double buffering
    # Fixed costs: sel (allocated double-buffered even though fetched once)
    # plus the per-iteration f32 y / mm-dtype v temporaries.
    sel_bytes = 2 * _round_up(HW, sub_mm) * _round_up(HW, 128) * mm_itemsize
    tmp_bytes = (_round_up(C, 8) * _round_up(HW, 128) * 4
                 + _round_up(C, sub_mm) * _round_up(HW, 128) * mm_itemsize)
    avail = budget - sel_bytes - tmp_bytes
    gb_max = max(1, avail // per_b) if avail >= per_b else 1
    gb = _largest_divisor_leq(B, gb_max)
    if gb == B and B >= 2:  # keep both v7x TensorCores busy
        gb = _largest_divisor_leq(B, B // 2)
    return gb


# ---------------------------------------------------------------------------
# Public entry point
# ---------------------------------------------------------------------------
def space_to_depth(x_nchw, block_size):
    """NCHW SpaceToDepth matching the PyTorch module's forward."""
    B, C, H, W = x_nchw.shape
    bs = int(block_size)
    if bs == 1:
        return x_nchw
    assert H % bs == 0 and W % bs == 0, (H, W, bs)
    Hb, Wb = H // bs, W // bs
    HW, HbWb = H * W, Hb * Wb
    dtype = x_nchw.dtype
    x_itemsize = jnp.dtype(dtype).itemsize

    # dtype-aware matmul path: bf16 stays native (exact with f32 accumulate),
    # everything else goes through f32 at HIGHEST precision (exact for f32).
    if dtype == jnp.bfloat16:
        mm_dtype, precision = jnp.bfloat16, None
    else:
        mm_dtype, precision = jnp.float32, lax.Precision.HIGHEST
    mm_itemsize = jnp.dtype(mm_dtype).itemsize

    sel = jnp.asarray(_build_selection_matrix(bs, H, W), dtype=mm_dtype)

    vmem_limit = _vmem_limit_bytes()
    gb = _choose_batch_block(B, C, HW, HbWb, bs, x_itemsize, mm_itemsize,
                             budget=int(vmem_limit * 0.75))

    # Free (row-major) regrouping -- no data movement, no extra HBM pass.
    x_view = x_nchw.reshape(B, C, HW)

    kernel = functools.partial(_space_to_depth_kernel, bs=bs, hbwb=HbWb,
                               mm_dtype=mm_dtype, precision=precision)

    out_view = pl.pallas_call(
        kernel,
        out_shape=jax.ShapeDtypeStruct((B, bs, bs, C, HbWb), dtype),
        grid=(B // gb,),
        in_specs=[
            pl.BlockSpec((gb, C, HW), lambda i: (i, 0, 0)),
            # Constant block index -> sel is DMA'd once, never re-fetched.
            pl.BlockSpec((HW, HW), lambda i: (0, 0)),
        ],
        out_specs=pl.BlockSpec((gb, bs, bs, C, HbWb),
                               lambda i: (i, 0, 0, 0, 0)),
        compiler_params=pltpu.CompilerParams(
            dimension_semantics=("parallel",),
            vmem_limit_bytes=int(vmem_limit),
        ),
        cost_estimate=pl.CostEstimate(
            flops=2 * B * C * HW * HW,
            transcendentals=0,
            bytes_accessed=2 * B * C * HW * x_itemsize + HW * HW * mm_itemsize),
    )(x_view, sel)

    # Free regrouping to the final NCHW result: (b, (hi,wi,c), hb, wb).
    return out_view.reshape(B, bs * bs * C, Hb, Wb)


def space_to_depth_reference(x, bs):
    # Pure-JAX replica of the PyTorch forward, for verification.
    B, C, H, W = x.shape
    o = jnp.transpose(x, (0, 2, 3, 1))                 # (B, H, W, C)
    o = o.reshape(B, H // bs, bs, W // bs, bs, C)      # (B, hb, hi, wb, wi, C)
    o = jnp.transpose(o, (0, 1, 3, 2, 4, 5))           # (B, hb, wb, hi, wi, C)
    o = o.reshape(B, H // bs, W // bs, bs * bs * C)
    return jnp.transpose(o, (0, 3, 1, 2))              # NCHW


if __name__ == "__main__":
    key = jax.random.PRNGKey(0)
    block_size = 2
    x = jax.random.normal(key, (2, 4, 16, 16), dtype=jnp.float32)  # NCHW

    s2d = jax.jit(functools.partial(space_to_depth, block_size=block_size))
    out = jax.block_until_ready(s2d(x))

    ref = space_to_depth_reference(x, block_size)
    assert out.shape == (2, 4 * block_size * block_size,
                         16 // block_size, 16 // block_size), out.shape
    assert out.dtype == x.dtype
    assert bool(jnp.allclose(out, ref, rtol=1e-6, atol=1e-6)), "f32 mismatch vs reference"

    # dtype-native (bf16) path: default-precision MXU, should be bit-exact.
    xb = x.astype(jnp.bfloat16)
    outb = jax.block_until_ready(
        jax.jit(functools.partial(space_to_depth, block_size=block_size))(xb))
    refb = space_to_depth_reference(xb, block_size)
    assert outb.dtype == jnp.bfloat16
    assert bool(jnp.array_equal(outb, refb)), "bf16 mismatch vs reference"

    print("KERNEL_OK")
</pallas_src>

<mosaic_0001>
module attributes {stable_mosaic.version = 11 : i64} {
  func.func @_space_to_depth_kernel(%arg0: i32, %arg1: memref<1x4x256xf32, #tpu.memory_space<vmem>>, %arg2: memref<256x256xf32, #tpu.memory_space<vmem>>, %arg3: memref<1x2x2x4x64xf32, #tpu.memory_space<vmem>>) attributes {dimension_semantics = [#tpu.dimension_semantics<parallel>], iteration_bounds = array<i64: 2>, scalar_prefetch = 0 : i64, scratch_operands = 0 : i64, tpu.core_type = #tpu.core_type<tc>, window_params = [{transform_indices = @transform_0, window_bounds = array<i64: 1, 4, 256>}, {pipeline_mode = #tpu.pipeline_mode<synchronous>, transform_indices = @transform_1, window_bounds = array<i64: 256, 256>}, {transform_indices = @transform_2, window_bounds = array<i64: 1, 2, 2, 4, 64>}]} {
    %c0_i32 = arith.constant 0 : i32
    %0 = arith.index_cast %c0_i32 : i32 to index
    %c0 = arith.constant 0 : index
    %c0_0 = arith.constant 0 : index
    %1 = vector.load %arg1[%0, %c0, %c0_0] : memref<1x4x256xf32, #tpu.memory_space<vmem>>, vector<1x4x256xf32>
    %2 = vector.shape_cast %1 : vector<1x4x256xf32> to vector<4x256xf32>
    %c0_1 = arith.constant 0 : index
    %c0_2 = arith.constant 0 : index
    %3 = vector.load %arg2[%c0_1, %c0_2] : memref<256x256xf32, #tpu.memory_space<vmem>>, vector<256x256xf32>
    %cst = arith.constant dense<0.000000e+00> : vector<4x256xf32>
    %4 = tpu.matmul %2, %3, %cst {dimension_numbers = #tpu.dot_dimension_numbers<[1], [0], [0], [1], [0, 0, 1, 1], [], []>, precision = #tpu.contract_precision<fp32>} : vector<4x256xf32>, vector<256x256xf32>, vector<4x256xf32> -> vector<4x256xf32>
    %5 = vector.extract_strided_slice %4 {offsets = [0, 0], sizes = [4, 64], strides = [1, 1]} : vector<4x256xf32> to vector<4x64xf32>
    %6 = arith.index_cast %c0_i32 : i32 to index
    %c0_3 = arith.constant 0 : index
    %c0_4 = arith.constant 0 : index
    %c0_5 = arith.constant 0 : index
    %c0_6 = arith.constant 0 : index
    %7 = vector.load %arg3[%6, %c0_3, %c0_4, %c0_5, %c0_6] : memref<1x2x2x4x64xf32, #tpu.memory_space<vmem>>, vector<1x1x1x4x64xf32>
    %8 = vector.shape_cast %7 : vector<1x1x1x4x64xf32> to vector<4x64xf32>
    %9 = vector.shape_cast %5 : vector<4x64xf32> to vector<1x1x1x4x64xf32>
    tpu.vector_store %arg3[%6, %c0_3, %c0_4, %c0_5, %c0_6], %9 {strides = array<i32>} : memref<1x2x2x4x64xf32, #tpu.memory_space<vmem>>, vector<1x1x1x4x64xf32>,
    %10 = vector.extract_strided_slice %4 {offsets = [0, 64], sizes = [4, 64], strides = [1, 1]} : vector<4x256xf32> to vector<4x64xf32>
    %11 = arith.index_cast %c0_i32 : i32 to index
    %c0_7 = arith.constant 0 : index
    %c1 = arith.constant 1 : index
    %c0_8 = arith.constant 0 : index
    %c0_9 = arith.constant 0 : index
    %12 = vector.load %arg3[%11, %c0_7, %c1, %c0_8, %c0_9] : memref<1x2x2x4x64xf32, #tpu.memory_space<vmem>>, vector<1x1x1x4x64xf32>
    %13 = vector.shape_cast %12 : vector<1x1x1x4x64xf32> to vector<4x64xf32>
    %14 = vector.shape_cast %10 : vector<4x64xf32> to vector<1x1x1x4x64xf32>
    tpu.vector_store %arg3[%11, %c0_7, %c1, %c0_8, %c0_9], %14 {strides = array<i32>} : memref<1x2x2x4x64xf32, #tpu.memory_space<vmem>>, vector<1x1x1x4x64xf32>,
    %15 = vector.extract_strided_slice %4 {offsets = [0, 128], sizes = [4, 64], strides = [1, 1]} : vector<4x256xf32> to vector<4x64xf32>
    %16 = arith.index_cast %c0_i32 : i32 to index
    %c1_10 = arith.constant 1 : index
    %c0_11 = arith.constant 0 : index
    %c0_12 = arith.constant 0 : index
    %c0_13 = arith.constant 0 : index
    %17 = vector.load %arg3[%16, %c1_10, %c0_11, %c0_12, %c0_13] : memref<1x2x2x4x64xf32, #tpu.memory_space<vmem>>, vector<1x1x1x4x64xf32>
    %18 = vector.shape_cast %17 : vector<1x1x1x4x64xf32> to vector<4x64xf32>
    %19 = vector.shape_cast %15 : vector<4x64xf32> to vector<1x1x1x4x64xf32>
    tpu.vector_store %arg3[%16, %c1_10, %c0_11, %c0_12, %c0_13], %19 {strides = array<i32>} : memref<1x2x2x4x64xf32, #tpu.memory_space<vmem>>, vector<1x1x1x4x64xf32>,
    %20 = vector.extract_strided_slice %4 {offsets = [0, 192], sizes = [4, 64], strides = [1, 1]} : vector<4x256xf32> to vector<4x64xf32>
    %21 = arith.index_cast %c0_i32 : i32 to index
    %c1_14 = arith.constant 1 : index
    %c1_15 = arith.constant 1 : index
    %c0_16 = arith.constant 0 : index
    %c0_17 = arith.constant 0 : index
    %22 = vector.load %arg3[%21, %c1_14, %c1_15, %c0_16, %c0_17] : memref<1x2x2x4x64xf32, #tpu.memory_space<vmem>>, vector<1x1x1x4x64xf32>
    %23 = vector.shape_cast %22 : vector<1x1x1x4x64xf32> to vector<4x64xf32>
    %24 = vector.shape_cast %20 : vector<4x64xf32> to vector<1x1x1x4x64xf32>
    tpu.vector_store %arg3[%21, %c1_14, %c1_15, %c0_16, %c0_17], %24 {strides = array<i32>} : memref<1x2x2x4x64xf32, #tpu.memory_space<vmem>>, vector<1x1x1x4x64xf32>,
    %c1_i32 = arith.constant 1 : i32
    return
  }
  func.func @transform_0(%arg0: i32) -> (i32, i32, i32) {
    %c0_i32 = arith.constant 0 : i32
    %c0_i32_0 = arith.constant 0 : i32
    %c0_i32_1 = arith.constant 0 : i32
    return %arg0, %c0_i32, %c0_i32_0 : i32, i32, i32
  }
  func.func @transform_1(%arg0: i32) -> (i32, i32) {
    %c0_i32 = arith.constant 0 : i32
    %c0_i32_0 = arith.constant 0 : i32
    %c0_i32_1 = arith.constant 0 : i32
    return %c0_i32, %c0_i32_0 : i32, i32
  }
  func.func @transform_2(%arg0: i32) -> (i32, i32, i32, i32, i32) {
    %c0_i32 = arith.constant 0 : i32
    %c0_i32_0 = arith.constant 0 : i32
    %c0_i32_1 = arith.constant 0 : i32
    %c0_i32_2 = arith.constant 0 : i32
    %c0_i32_3 = arith.constant 0 : i32
    return %arg0, %c0_i32, %c0_i32_0, %c0_i32_1, %c0_i32_2 : i32, i32, i32, i32, i32
  }
}

</mosaic_0001>

<bundles_post_ra>
// kernel: space_to_depth.1
= control target key start
LH: loop header
LB: loop body
LE: loop exit
PB: predicated region body
PF: predicated region fallthrough
CT: control target
= control target key end

     0   :  { %7 = vsyncpa [#allocation3], 0  ;;  %s1780_s9 = smov 0   ;;  %s2829_s0 = inlined_call_operand.vmem [shape: f32[2,4,256], index: 0, kind: input, shape index: {}]   ;;  %s2830_s1 = inlined_call_operand.hbm [shape: f32[256,256], index: 1, kind: input, shape index: {}]   ;;  %s2831_s2 = inlined_call_operand.vmem [shape: f32[2,2,2,4,64], index: 2, kind: output, shape index: {}]  }
   0x1 LB: > { %s102_s12 = sshll.u32 %s2830_s1, 4  ;;  %s1789_s13 = sadd.s32 4294967295, %s1759_s9   ;;  %s1759_s9 = sphi %s1780_s9, %s13_s9   ;;  %s103_s12 = int_to_ptr.hbm [resolvable:$true] %s102_s12 }
   0x2   : > { %p1681_p0 = scmp.ge.s32.totalorder %s1759_s9, 1  ;;  %p91_p1 = scmp.lt.s32.totalorder %s1759_s9, 3 }
   0x3   : > { %p1705_p2 = scmp.eq.s32.totalorder %s1789_s13, 0  ;;  %s1761_s14 = smov [#allocation2]  }
   0x4   : > { %p92_p3 = pnand %p1681_p0, %p91_p1  ;;  %s104_s15 = sshll.u32 %s1761_s14, 4  ;;  %s105_s15 = int_to_ptr.vmem [resolvable:$true] %s104_s15 }
   0x5   : > { %s1762_s16 = smov 256   ;;  %s1763_s17 = smov 16  }
   0x6   : > { %p1701_p4 = pneg %p92_p3  ;;  %128 = sbr.rel (%p92_p3) target bundleno = 471 (0x1d7), region = 28 }
   0x8   : > { %p1702_p5 = pnand %p1705_p2, %p1701_p4 }
   0xa   : > { %1704 = dma.hbm_to_vmem [thread:$0]  (!%p1702_p5), %s103_s12, 8192, %s105_s15, [#allocation3], %s1762_s16, %s1762_s16, %s1763_s17  }
   0xb   : > { %1754 = dma.done.wait (%p1705_p2), [#allocation3], 8192  }
   0xc   : > { %1756 = vsyncadd (%p1705_p2), [#allocation3], 4294959104  ;;  %v192_v0 = vld [vmem:[#allocation2 + $0xf0] sm:$0xff]  ;;  %v190_v1 = vld [vmem:[#allocation2 + $0xe0] sm:$0xff]  ;;  %p151_p6 = scmp.lt.s32.totalorder %s1789_s13, 1  ;;  %vm1596_vm0 = vcmask 519168  }
   0xd   : > { %v188_v2 = vld [vmem:[#allocation2 + $0xd0] sm:$0xff]  ;;  %v1795_v3 = vand.u32 4294901760, %v192_v0  ;;  %v1797_v4 = vand.u32 4294901760, %v190_v1  ;;  %v186_v6 = vld [vmem:[#allocation2 + $0xc0] sm:$0xff]  ;;  %s1764_s26 = smov 64  }
   0xe   : > { %v1799_v5 = vand.u32 4294901760, %v188_v2  ;;  %v184_v7 = vld [vmem:[#allocation2 + $0xb0] sm:$0xff]  ;;  %v182_v8 = vld [vmem:[#allocation2 + $0xa0] sm:$0xff]  ;;  %v1801_v9 = vand.u32 4294901760, %v186_v6  ;;  %s2961_s13 = smov (!%p151_p6, %s1789_s13), 1 }
   0xf   : > { %v1803_v10 = vand.u32 4294901760, %v184_v7  ;;  %v1805_v11 = vand.u32 4294901760, %v182_v8  ;;  %v180_v12 = vld [vmem:[#allocation2 + $0x90] sm:$0xff]  ;;  %v178_v13 = vld [vmem:[#allocation2 + $0x80] sm:$0xff]  ;;  %233 = vmatpush.msra.mxu0 %v1795_v3  ;;  %v1809_v14 = vsub.f32 %v192_v0, %v1795_v3  ;;  %v1812_v15 = vsub.f32 %v190_v1, %v1797_v4  ;;  %429 = vmatpush.msra.mxu3 %v1795_v3  ;;  %s1695_s18 = sshll.u32 %s2961_s13, 3  ;;  %s1696_s22 = sshll.u32 %s2961_s13, 4 }
  0x10   : > { %v1816_v16 = vsub.f32 %v188_v2, %v1799_v5  ;;  %v1818_v17 = vand.u32 4294901760, %v180_v12  ;;  %v176_v18 = vld [vmem:[#allocation2 + $0x70] sm:$0xff]  ;;  %v1821_v19 = vsub.f32 %v186_v6, %v1801_v9  ;;  %v1839_v25 = vand.u32 4294901760, %v178_v13  ;;  %v174_v26 = vld [vmem:[#allocation2 + $0x60] sm:$0xff]  ;;  %s155_s21 = scalar_lea.vmem %s2829_s0, %s1695_s18  ;;  %s2816_s25 = scalar_lea.vmem %s2831_s2, %s1696_s22 }
  0x11   : > { %v1824_v20 = vsub.f32 %v184_v7, %v1803_v10  ;;  %v1827_v21 = vsub.f32 %v182_v8, %v1805_v11  ;;  %235 = vmatpush.msra.mxu0 %v1797_v4  ;;  %376 = vmatpush.msra.mxu2 %v1809_v14  ;;  %v275_v22 = vand.u32 4294901760, %v1809_v14  ;;  %v2847_v23 = vand.u32 4294901760, %v1812_v15  ;;  %v172_v34 = vld [vmem:[#allocation2 + $0x50] sm:$0xff]  ;;  %v170_v42 = vld [vmem:[#allocation2 + $0x40] sm:$0xff]  ;;  %v161_v55 = vld [vmem:[%s155_s21] sm:$0xff] }
  0x12   : > { %v2845_v24 = vand.u32 4294901760, %v1816_v16  ;;  %431 = vmatpush.msra.mxu3 %v1797_v4  ;;  %v2843_v27 = vand.u32 4294901760, %v1821_v19  ;;  %v1843_v28 = vand.u32 4294901760, %v176_v18  ;;  %v1846_v29 = vsub.f32 %v180_v12, %v1818_v17  ;;  %v168_v48 = vld [vmem:[#allocation2 + $0x30] sm:$0xff]  ;;  %v166_v54 = vld [vmem:[#allocation2 + $0x20] sm:$0xff] }
  0x13   : > { %237 = vmatpush.msra.mxu0 %v1799_v5  ;;  %379 = vmatpush.msra.mxu2 %v1812_v15  ;;  %v276_v30 = vsub.f32 %v1809_v14, %v275_v22  ;;  %v282_v31 = vsub.f32 %v1812_v15, %v2847_v23  ;;  %v2841_v33 = vand.u32 4294901760, %v1824_v20  ;;  %v1861_v35 = vand.u32 4294901760, %v174_v26  ;;  %v224_v60 = vld [vmem:[#allocation2 + $0x1f0] sm:$0xff]  ;;  %227 = vst [vmem:[#allocation1] ss:$2 sm:$0xff] %v161_v55  ;;  %v162_v6 = vld [vmem:[#allocation2] sm:$0xff] }
  0x14   : > { %v288_v32 = vsub.f32 %v1816_v16, %v2845_v24  ;;  %433 = vmatpush.msra.mxu3 %v1799_v5  ;;  %v2839_v36 = vand.u32 4294901760, %v1827_v21  ;;  %v294_v39 = vsub.f32 %v1821_v19, %v2843_v27  ;;  %v1871_v40 = vsub.f32 %v178_v13, %v1839_v25  ;;  %v164_v62 = vld [vmem:[#allocation2 + $0x10] sm:$0xff]  ;;  %v222_v7 = vld [vmem:[#allocation2 + $0x1e0] sm:$0xff] }
  0x15   : > { %239 = vmatpush.msra.mxu0 %v1801_v9  ;;  %v277_v37 = vand.u32 4294901760, %v276_v30  ;;  %382 = vmatpush.msra.mxu2 %v1816_v16  ;;  %v283_v38 = vand.u32 4294901760, %v282_v31  ;;  %v1874_v41 = vand.u32 4294901760, %v172_v34  ;;  %v300_v44 = vsub.f32 %v1824_v20, %v2841_v33 }
  0x16   : > { %435 = vmatpush.msra.mxu3 %v1801_v9  ;;  %v289_v43 = vand.u32 4294901760, %v288_v32  ;;  %v2838_v45 = vand.u32 4294901760, %v1846_v29  ;;  %v1882_v46 = vsub.f32 %v176_v18, %v1843_v28  ;;  %v306_v47 = vsub.f32 %v1827_v21, %v2839_v36 }
  0x17   : > { %241 = vmatpush.msra.mxu0 %v1803_v10  ;;  %278 = vmatpush.msra.mxu1 %v277_v37  ;;  %v295_v49 = vand.u32 4294901760, %v294_v39  ;;  %v1893_v50 = vand.u32 4294901760, %v170_v42  ;;  %v2837_v51 = vand.u32 4294901760, %v1871_v40  ;;  %v1897_v52 = vsub.f32 %v174_v26, %v1861_v35 }
  0x18   : > { %385 = vmatpush.msra.mxu2 %v1821_v19  ;;  %437 = vmatpush.msra.mxu3 %v1803_v10  ;;  %v1902_v53 = vsub.f32 %v172_v34, %v1874_v41  ;;  %v301_v56 = vand.u32 4294901760, %v300_v44  ;;  %v312_v57 = vsub.f32 %v1846_v29, %v2838_v45  ;;  %v1908_v58 = vand.u32 4294901760, %v168_v48  ;;  %v220_v34 = vld [vmem:[#allocation2 + $0x1d0] sm:$0xff]  ;;  %v210_v45 = vld [vmem:[#allocation2 + $0x180] sm:$0xff] }
  0x19   : > { %243 = vmatpush.msra.mxu0 %v1805_v11  ;;  %284 = vmatpush.msra.mxu1 %v283_v38  ;;  %v2836_v59 = vand.u32 4294901760, %v1882_v46  ;;  %v307_v61 = vand.u32 4294901760, %v306_v47  ;;  %v318_v63 = vsub.f32 %v1871_v40, %v2837_v51  ;;  %v1917_v0 = vand.u32 4294901760, %v166_v54  ;;  %v218_v47 = vld [vmem:[#allocation2 + $0x1c0] sm:$0xff] }
  0x1a   : > { %388 = vmatpush.msra.mxu2 %v1824_v20  ;;  %439 = vmatpush.msra.mxu3 %v1805_v11  ;;  %v2834_v1 = vand.u32 4294901760, %v1897_v52  ;;  %v1921_v2 = vsub.f32 %v170_v42, %v1893_v50  ;;  %v2833_v8 = vand.u32 4294901760, %v1902_v53  ;;  %v1926_v12 = vand.u32 4294901760, %v224_v60 }
  0x1b   : > { %245 = vmatpush.msra.mxu0 %v1818_v17  ;;  %290 = vmatpush.msra.mxu1 %v289_v43  ;;  %v313_v13 = vand.u32 4294901760, %v312_v57  ;;  %v324_v18 = vsub.f32 %v1882_v46, %v2836_v59  ;;  %v1932_v26 = vand.u32 4294901760, %v164_v62  ;;  %v1935_v30 = vsub.f32 %v168_v48, %v1908_v58 }
  0x1c   : > { %391 = vmatpush.msra.mxu2 %v1827_v21  ;;  %441 = vmatpush.msra.mxu3 %v1818_v17  ;;  %v1939_v31 = vand.u32 4294901760, %v162_v6  ;;  %v1941_v32 = vand.u32 4294901760, %v222_v7  ;;  %v319_v37 = vand.u32 4294901760, %v318_v63  ;;  %v330_v38 = vsub.f32 %v1897_v52, %v2834_v1 }
  0x1d   : > { %247 = vmatpush.msra.mxu0 %v1839_v25  ;;  %296 = vmatpush.msra.mxu1 %v295_v49  ;;  %v2832_v39 = vand.u32 4294901760, %v1921_v2  ;;  %v1949_v42 = vsub.f32 %v166_v54, %v1917_v0  ;;  %v336_v43 = vsub.f32 %v1902_v53, %v2833_v8  ;;  %v1957_v44 = vsub.f32 %v224_v60, %v1926_v12  ;;  %v216_v60 = vld [vmem:[#allocation2 + $0x1b0] sm:$0xff] }
  0x1e   : > { %394 = vmatpush.msra.mxu2 %v1846_v29  ;;  %443 = vmatpush.msra.mxu3 %v1839_v25  ;;  %2880 = vst [vmem:[#allocation5_spill] sm:$0xff] %v1939_v31  ;;  %v325_v48 = vand.u32 4294901760, %v324_v18  ;;  %v2835_v49 = vand.u32 4294901760, %v1935_v30  ;;  %v1962_v54 = vsub.f32 %v164_v62, %v1932_v26  ;;  %v1964_v55 = vand.u32 4294901760, %v220_v34  ;;  %v214_v18 = vld [vmem:[#allocation2 + $0x1a0] sm:$0xff] }
  0x1f   : > { %249 = vmatpush.msra.mxu0 %v1843_v28  ;;  %302 = vmatpush.msra.mxu1 %v301_v56  ;;  %v1969_v56 = vsub.f32 %v162_v6, %v1939_v31  ;;  %v1972_v57 = vsub.f32 %v222_v7, %v1941_v32  ;;  %v342_v62 = vsub.f32 %v1921_v2, %v2832_v39  ;;  %v2840_v63 = vand.u32 4294901760, %v1949_v42 }
  0x20   : > { %397 = vmatpush.msra.mxu2 %v1871_v40  ;;  %445 = vmatpush.msra.mxu3 %v1843_v28  ;;  %v337_v6 = vand.u32 4294901760, %v336_v43  ;;  %v2842_v7 = vand.u32 4294901760, %v1957_v44  ;;  %v1990_v39 = vsub.f32 %v220_v34, %v1964_v55  ;;  %v1992_v8 = vand.u32 4294901760, %v216_v60  ;;  %v212_v43 = vld [vmem:[#allocation2 + $0x190] sm:$0xff] }
  0x21   : > { %251 = vmatpush.msra.mxu0 %v1861_v35  ;;  %308 = vmatpush.msra.mxu1 %v307_v61  ;;  %v331_v61 = vand.u32 4294901760, %v330_v38  ;;  %v2844_v38 = vand.u32 4294901760, %v1962_v54  ;;  %v2848_v1 = vand.u32 4294901760, %v1969_v56  ;;  %v354_v34 = vsub.f32 %v1949_v42, %v2840_v63 }
  0x22   : > { %400 = vmatpush.msra.mxu2 %v1882_v46  ;;  %447 = vmatpush.msra.mxu3 %v1861_v35  ;;  %v2005_v51 = vand.u32 4294901760, %v214_v18  ;;  %v617_v36 = vsub.f32 %v1957_v44, %v2842_v7  ;;  %v2849_v63 = vand.u32 4294901760, %v1990_v39  ;;  %v2020_v33 = vsub.f32 %v216_v60, %v1992_v8 }
  0x23   : > { %253 = vmatpush.msra.mxu0 %v1874_v41  ;;  %314 = vmatpush.msra.mxu1 %v313_v13  ;;  %v1979_v13 = vand.u32 4294901760, %v218_v47  ;;  %v2027_v27 = vand.u32 4294901760, %v210_v45  ;;  %v366_v60 = vsub.f32 %v1969_v56, %v2848_v1  ;;  %v2881_v14 = vand.u32 4294901760, %v1812_v15 }
  0x24   : > { %403 = vmatpush.msra.mxu2 %v1897_v52  ;;  %449 = vmatpush.msra.mxu3 %v1874_v41  ;;  %v2035_v24 = vsub.f32 %v214_v18, %v2005_v51  ;;  %v629_v1 = vsub.f32 %v1990_v39, %v2849_v63  ;;  %v2883_v15 = vand.u32 4294901760, %v1816_v16  ;;  %v2885_v16 = vand.u32 4294901760, %v1821_v19 }
  0x25   : > { %255 = vmatpush.msra.mxu0 %v1893_v50  ;;  %320 = vmatpush.msra.mxu1 %v319_v37  ;;  %v348_v37 = vsub.f32 %v1935_v30, %v2835_v49  ;;  %v343_v49 = vand.u32 4294901760, %v342_v62  ;;  %v2003_v59 = vsub.f32 %v218_v47, %v1979_v13  ;;  %v360_v47 = vsub.f32 %v1962_v54, %v2844_v38 }
  0x26   : > { %406 = vmatpush.msra.mxu2 %v1902_v53  ;;  %451 = vmatpush.msra.mxu3 %v1893_v50  ;;  %v2887_v19 = vand.u32 4294901760, %v1824_v20  ;;  %v2889_v20 = vand.u32 4294901760, %v1827_v21  ;;  %v2892_v21 = vand.u32 4294901760, %v1846_v29  ;;  %v2894_v29 = vand.u32 4294901760, %v1871_v40 }
  0x27   : > { %257 = vmatpush.msra.mxu0 %v1908_v58  ;;  %326 = vmatpush.msra.mxu1 %v325_v48  ;;  %v2846_v48 = vand.u32 4294901760, %v1972_v57  ;;  %v349_v62 = vand.u32 4294901760, %v348_v37  ;;  %v355_v37 = vand.u32 4294901760, %v354_v34  ;;  %v361_v34 = vand.u32 4294901760, %v360_v47 }
  0x28   : > { %409 = vmatpush.msra.mxu2 %v1921_v2  ;;  %453 = vmatpush.msra.mxu3 %v1908_v58  ;;  %v2882_v47 = vand.u32 4294901760, %v2003_v59  ;;  %v2896_v40 = vand.u32 4294901760, %v1882_v46 }
  0x29   : > { %259 = vmatpush.msra.mxu0 %v1917_v0  ;;  %332 = vmatpush.msra.mxu1 %v331_v61  ;;  %v2012_v61 = vand.u32 4294901760, %v212_v43  ;;  %v623_v7 = vsub.f32 %v1972_v57, %v2846_v48  ;;  %v618_v48 = vand.u32 4294901760, %v617_v36  ;;  %v2054_v36 = vsub.f32 %v210_v45, %v2027_v27 }
  0x2a   : > { %412 = vmatpush.msra.mxu2 %v1935_v30  ;;  %455 = vmatpush.msra.mxu3 %v1917_v0  ;;  %v635_v63 = vsub.f32 %v2003_v59, %v2882_v47 }
  0x2b   : > { %261 = vmatpush.msra.mxu0 %v1932_v26  ;;  %338 = vmatpush.msra.mxu1 %v337_v6  ;;  %v208_v6 = vld [vmem:[#allocation2 + $0x170] sm:$0xff]  ;;  %v2041_v23 = vsub.f32 %v212_v43, %v2012_v61 }
  0x2c   : > { %415 = vmatpush.msra.mxu2 %v1949_v42  ;;  %457 = vmatpush.msra.mxu3 %v1932_v26  ;;  %v2048_v38 = vand.u32 4294901760, %v208_v6  ;;  %v204_v43 = vld [vmem:[#allocation2 + $0x150] sm:$0xff] }
  0x2d   : > { %263 = vmatpush.msra.mxu0 %v1939_v31  ;;  %344 = vmatpush.msra.mxu1 %v343_v49  ;;  %v206_v49 = vld [vmem:[#allocation2 + $0x160] sm:$0xff]  ;;  %v2073_v18 = vand.u32 4294901760, %v204_v43 }
  0x2e   : > { %418 = vmatpush.msra.mxu2 %v1962_v54  ;;  %459 = vmatpush.msra.mxu3 %v1939_v31  ;;  %v2061_v31 = vand.u32 4294901760, %v206_v49  ;;  %v2071_v47 = vsub.f32 %v208_v6, %v2048_v38 }
  0x2f   : > { %470 = vmatpush.msrb.mxu0 %v275_v22  ;;  %350 = vmatpush.msra.mxu1 %v349_v62  ;;  %v624_v22 = vand.u32 4294901760, %v623_v7  ;;  %v367_v62 = vand.u32 4294901760, %v366_v60  ;;  %v202_v7 = vld [vmem:[#allocation2 + $0x140] sm:$0xff]  ;;  %v2884_v60 = vand.u32 4294901760, %v2020_v33 }
  0x30   : > { %421 = vmatpush.msra.mxu2 %v1969_v56  ;;  %619 = vmatpush.msrb.mxu3 %v618_v48  ;;  %v2083_v6 = vsub.f32 %v206_v49, %v2061_v31  ;;  %v2085_v45 = vand.u32 4294901760, %v202_v7  ;;  %v2096_v49 = vsub.f32 %v204_v43, %v2073_v18 }
  0x31   : > { %474 = vmatpush.msrb.mxu0 %v2881_v14  ;;  %356 = vmatpush.msra.mxu1 %v355_v37  ;;  %v630_v37 = vand.u32 4294901760, %v629_v1  ;;  %v641_v14 = vsub.f32 %v2020_v33, %v2884_v60  ;;  %v636_v1 = vand.u32 4294901760, %v635_v63 }
  0x32   : > { %574 = vmatpush.msrb.mxu2 %v1926_v12  ;;  %625 = vmatpush.msrb.mxu3 %v624_v22  ;;  %v2888_v22 = vand.u32 4294901760, %v2041_v23  ;;  %v2109_v43 = vsub.f32 %v202_v7, %v2085_v45 }
  0x33   : > { %478 = vmatpush.msrb.mxu0 %v2883_v15  ;;  %362 = vmatpush.msra.mxu1 %v361_v34  ;;  %v200_v15 = vld [vmem:[#allocation2 + $0x130] sm:$0xff]  ;;  %v2886_v34 = vand.u32 4294901760, %v2035_v24  ;;  %v642_v63 = vand.u32 4294901760, %v641_v14 }
  0x34   : > { %576 = vmatpush.msrb.mxu2 %v1941_v32  ;;  %631 = vmatpush.msrb.mxu3 %v630_v37  ;;  %v2098_v48 = vand.u32 4294901760, %v200_v15 }
  0x35   : > { %482 = vmatpush.msrb.mxu0 %v2885_v16  ;;  %368 = vmatpush.msra.mxu1 %v367_v62  ;;  %v647_v60 = vsub.f32 %v2035_v24, %v2886_v34  ;;  %v653_v62 = vsub.f32 %v2041_v23, %v2888_v22  ;;  %v228_v16 = vld.sshfl [vmem:[#allocation1] sm:$0xff pattern:$0x75316420]  ;;  %v198_v22 = vld [vmem:[#allocation2 + $0x120] sm:$0xff] }
  0x36   : > { %578 = vmatpush.msrb.mxu2 %v1964_v55  ;;  %637 = vmatpush.msrb.mxu3 %v636_v1  ;;  %v2111_v34 = vand.u32 4294901760, %v228_v16  ;;  %v2893_v1 = vand.u32 4294901760, %v2071_v47  ;;  %v2121_v7 = vand.u32 4294901760, %v198_v22  ;;  %v2124_v14 = vsub.f32 %v200_v15, %v2098_v48 }
  0x37   : > { %486 = vmatpush.msrb.mxu0 %v2887_v19  ;;  %537 = vmatpush.msrb.mxu1 %v1795_v3  ;;  %v2890_v3 = vand.u32 4294901760, %v2054_v36  ;;  %v648_v37 = vand.u32 4294901760, %v647_v60 }
  0x38   : > { %580 = vmatpush.msrb.mxu2 %v1979_v13  ;;  %2891 = vst [vmem:[#allocation6_spill] sm:$0xff] %v2111_v34  ;;  %643 = vmatpush.msrb.mxu3 %v642_v63  ;;  %v665_v60 = vsub.f32 %v2071_v47, %v2893_v1  ;;  %v2135_v1 = vsub.f32 %v228_v16, %v2111_v34 }
  0x39   : > { %490 = vmatpush.msrb.mxu0 %v2889_v20  ;;  %539 = vmatpush.msrb.mxu1 %v1797_v4  ;;  %v659_v19 = vsub.f32 %v2054_v36, %v2890_v3  ;;  %v654_v4 = vand.u32 4294901760, %v653_v62  ;;  %v196_v20 = vld [vmem:[#allocation2 + $0x110] sm:$0xff]  ;;  %v2895_v62 = vand.u32 4294901760, %v2083_v6  ;;  %v194_v3 = vld [vmem:[#allocation2 + $0x100] sm:$0xff]  ;;  %v2148_v16 = vsub.f32 %v198_v22, %v2121_v7 }
  0x3a   : > { %582 = vmatpush.msrb.mxu2 %v1992_v8  ;;  %649 = vmatpush.msrb.mxu3 %v648_v37  ;;  %v2137_v15 = vand.u32 4294901760, %v196_v20  ;;  %v2153_v46 = vand.u32 4294901760, %v194_v3 }
  0x3b   : > { %494 = vmatpush.msrb.mxu0 %v2892_v21  ;;  %541 = vmatpush.msrb.mxu1 %v1799_v5  ;;  %v660_v5 = vand.u32 4294901760, %v659_v19  ;;  %v671_v63 = vsub.f32 %v2083_v6, %v2895_v62  ;;  %v682_v21 = vand.u32 4294901760, %v2109_v43  ;;  %v2897_v19 = vand.u32 4294901760, %v2096_v49 }
  0x3c   : > { %584 = vmatpush.msrb.mxu2 %v2005_v51  ;;  %655 = vmatpush.msrb.mxu3 %v654_v4  ;;  %v2898_v62 = vand.u32 4294901760, %v1897_v52  ;;  %v2163_v22 = vsub.f32 %v196_v20, %v2137_v15  ;;  %v2900_v52 = vand.u32 4294901760, %v1902_v53  ;;  %v2177_v53 = vsub.f32 %v194_v3, %v2153_v46 }
  0x3d   : > { %498 = vmatpush.msrb.mxu0 %v2894_v29  ;;  %543 = vmatpush.msrb.mxu1 %v1801_v9  ;;  %v666_v9 = vand.u32 4294901760, %v665_v60  ;;  %v677_v37 = vsub.f32 %v2096_v49, %v2897_v19  ;;  %v688_v29 = vand.u32 4294901760, %v2124_v14  ;;  %v683_v4 = vsub.f32 %v2109_v43, %v682_v21 }
  0x3e   : > { %586 = vmatpush.msrb.mxu2 %v2012_v61  ;;  %661 = vmatpush.msrb.mxu3 %v660_v5  ;;  %v2160_v60 = vand.u32 4294901760, %v2135_v1  ;;  %v2901_v19 = vand.u32 4294901760, %v1921_v2  ;;  %v2904_v3 = vand.u32 4294901760, %v1949_v42  ;;  %v2907_v42 = vand.u32 4294901760, %v1969_v56 }
  0x3f   : > { %502 = vmatpush.msrb.mxu0 %v2896_v40  ;;  %545 = vmatpush.msrb.mxu1 %v1803_v10  ;;  %v672_v10 = vand.u32 4294901760, %v671_v63  ;;  %v678_v5 = vand.u32 4294901760, %v677_v37  ;;  %v689_v63 = vsub.f32 %v2124_v14, %v688_v29  ;;  %v694_v40 = vand.u32 4294901760, %v2148_v16 }
  0x40   : > { %588 = vmatpush.msrb.mxu2 %v2027_v27  ;;  %2899 = vst [vmem:[#allocation7_spill] sm:$0xff] %v2160_v60  ;;  %667 = vmatpush.msrb.mxu3 %v666_v9  ;;  %v267_v20 = vsub.f32 %v2135_v1, %v2160_v60  ;;  %v700_v9 = vand.u32 4294901760, %v2163_v22 }
  0x41   : > { %506 = vmatpush.msrb.mxu0 %v2898_v62  ;;  %547 = vmatpush.msrb.mxu1 %v1805_v11  ;;  %v229_v11 = vld.sshfl [vmem:[#allocation1 + $0x8] sm:$0xff pattern:$0x75316420]  ;;  %v2903_v62 = vand.u32 4294901760, %v1935_v30  ;;  %v695_v2 = vsub.f32 %v2148_v16, %v694_v40 }
  0x42   : > { %590 = vmatpush.msrb.mxu2 %v2048_v38  ;;  %673 = vmatpush.msrb.mxu3 %v672_v10  ;;  %v2183_v37 = vand.u32 4294901760, %v229_v11  ;;  %v706_v10 = vand.u32 4294901760, %v2177_v53  ;;  %v2197_v30 = vand.u32 4294901760, %v267_v20 }
  0x43   : > { %510 = vmatpush.msrb.mxu0 %v2900_v52  ;;  %549 = vmatpush.msrb.mxu1 %v1818_v17  ;;  %v684_v17 = vand.u32 4294901760, %v683_v4  ;;  %v2906_v52 = vand.u32 4294901760, %v1962_v54 }
  0x44   : > { %592 = vmatpush.msrb.mxu2 %v2061_v31  ;;  %2902 = vst [vmem:[#allocation8_spill] sm:$0xff] %v2183_v37  ;;  %679 = vmatpush.msrb.mxu3 %v678_v5  ;;  %v2203_v4 = vsub.f32 %v229_v11, %v2183_v37  ;;  %v707_v5 = vsub.f32 %v2177_v53, %v706_v10 }
  0x45   : > { %514 = vmatpush.msrb.mxu0 %v2901_v19  ;;  %551 = vmatpush.msrb.mxu1 %v1839_v25  ;;  %v690_v25 = vand.u32 4294901760, %v689_v63  ;;  %v2912_v63 = vld [vmem:[#allocation5_spill] sm:$0xff] }
  0x46   : > { %594 = vmatpush.msrb.mxu2 %v2073_v18  ;;  %685 = vmatpush.msrb.mxu3 %v684_v17  ;;  %2905 = vst [vmem:[#allocation9_spill] sm:$0xff] %v2203_v4  ;;  %v177_v17 = vld [vmem:[#allocation2 + $0x78] sm:$0xff] }
  0x47   : > { %518 = vmatpush.msrb.mxu0 %v2903_v62  ;;  %553 = vmatpush.msrb.mxu1 %v1843_v28  ;;  %v701_v28 = vsub.f32 %v2163_v22, %v700_v9  ;;  %v175_v62 = vld [vmem:[#allocation2 + $0x68] sm:$0xff] }
  0x48   : > { %596 = vmatpush.msrb.mxu2 %v2085_v45  ;;  %691 = vmatpush.msrb.mxu3 %v690_v25  ;;  %v2365_v25 = vand.u32 4294901760, %v177_v17 }
  0x49   : > { %522 = vmatpush.msrb.mxu0 %v2904_v3  ;;  %555 = vmatpush.msrb.mxu1 %v1861_v35  ;;  %v696_v35 = vand.u32 4294901760, %v695_v2  ;;  %v702_v54 = vand.u32 4294901760, %v701_v28 }
  0x4a   : > { %598 = vmatpush.msrb.mxu2 %v2098_v48  ;;  %269 = vmatmul.f32.vlgmr.msra.gmra.mxu0 %v2197_v30 }
  0x4b   : > { %526 = vmatpush.msrb.mxu0 %v2906_v52  ;;  %557 = vmatpush.msrb.mxu1 %v1874_v41  ;;  %v2218_v41 = vand.u32 4294901760, %v2203_v4  ;;  %v173_v52 = vld [vmem:[#allocation2 + $0x58] sm:$0xff] }
  0x4c   : > { %600 = vmatpush.msrb.mxu2 %v2121_v7  ;;  %697 = vmatpush.msrb.mxu3 %v696_v35 }
  0x4d   : > { %530 = vmatpush.msrb.mxu0 %v2907_v42  ;;  %559 = vmatpush.msrb.mxu1 %v1893_v50  ;;  %2908 = vst [vmem:[#allocation10_spill] sm:$0xff] %v2218_v41  ;;  %v708_v50 = vand.u32 4294901760, %v707_v5  ;;  %v608_v56 = vsub.f32 %v2203_v4, %v2218_v41 }
  0x4e   : > { %602 = vmatpush.msrb.mxu2 %v2137_v15  ;;  %703 = vmatpush.msrb.mxu3 %v702_v54 }
  0x4f   : > { %717 = vmatpush.msra.mxu0 %v1957_v44  ;;  %561 = vmatpush.msrb.mxu1 %v1908_v58  ;;  %v2909_v58 = vand.u32 4294901760, %v1957_v44  ;;  %v2237_v11 = vand.u32 4294901760, %v608_v56  ;;  %v2914_v44 = vand.u32 4294901760, %v2003_v59 }
  0x50   : > { %424 = vmatmul.f32.vlgmr.msra.gmra.mxu2 %v2135_v1  ;;  %463 = vmatmul.f32.vlgmr.msra.gmra.mxu3 %v2160_v60 }
  0x51   : > { %720 = vmatpush.msra.mxu0 %v1972_v57  ;;  %563 = vmatpush.msrb.mxu1 %v1917_v0  ;;  %v2910_v0 = vand.u32 4294901760, %v1972_v57  ;;  %2911 = vst [vmem:[#allocation11_spill] sm:$0xff] %v2237_v11  ;;  %v2921_v57 = vand.u32 4294901760, %v2096_v49 }
  0x52   : > { %604 = vmatpush.msrb.mxu2 %v2153_v46  ;;  %709 = vmatpush.msrb.mxu3 %v708_v50  ;;  %v2392_v50 = vsub.f32 %v177_v17, %v2365_v25  ;;  %v225_v17 = vld [vmem:[#allocation2 + $0x1f8] sm:$0xff] }
  0x53   : > { %723 = vmatpush.msra.mxu0 %v1990_v39  ;;  %565 = vmatpush.msrb.mxu1 %v1932_v26  ;;  %v2913_v26 = vand.u32 4294901760, %v1990_v39 }
  0x54   : > { %811 = vmatpush.msra.mxu2 %v2909_v58  ;;  %370 = vmatmul.f32.vlgmr.msra.gmra.mxu1 %v2111_v34 }
  0x55   : > { %726 = vmatpush.msra.mxu0 %v2003_v59  ;;  %878 = vmatpush.msra.mxu3 %v1926_v12  ;;  %v2916_v59 = vand.u32 4294901760, %v2035_v24 }
  0x56   : > { %815 = vmatpush.msra.mxu2 %v2910_v0  ;;  %567 = vmatpush.msrb.mxu1 %v2912_v63  ;;  %v2398_v0 = vand.u32 4294901760, %v173_v52 }
  0x57   : > { %729 = vmatpush.msra.mxu0 %v2020_v33  ;;  %880 = vmatpush.msra.mxu3 %v1941_v32 }
  0x58   : > { %770 = vmatpush.msra.mxu1 %v1926_v12  ;;  %819 = vmatpush.msra.mxu2 %v2913_v26  ;;  %v2915_v12 = vand.u32 4294901760, %v2020_v33  ;;  %v2917_v33 = vand.u32 4294901760, %v2041_v23 }
  0x59   : > { %610 = vmatmul.f32.vlgmr.msrb.gmra.mxu2 %v2237_v11  ;;  %732 = vmatpush.msra.mxu0 %v2035_v24  ;;  %v193_v24 = vld [vmem:[#allocation2 + $0xf8] sm:$0xff] }
  0x5a   : > { %772 = vmatpush.msra.mxu1 %v1941_v32  ;;  %823 = vmatpush.msra.mxu2 %v2914_v44  ;;  %v2918_v32 = vand.u32 4294901760, %v2054_v36  ;;  %v2285_v39 = vand.u32 4294901760, %v193_v24  ;;  %v169_v44 = vld [vmem:[#allocation2 + $0x38] sm:$0xff] }
  0x5b   : > { %882 = vmatpush.msra.mxu3 %v1964_v55  ;;  %532 = vmatmul.f32.vlgmr.msrb.gmra.mxu0 %v2111_v34 }
  0x5c   : > { %711 = vmatmul.f32.vlgmr.msrb.gmra.mxu3 %v2183_v37  ;;  %735 = vmatpush.msra.mxu0 %v2041_v23  ;;  %v191_v23 = vld [vmem:[#allocation2 + $0xe8] sm:$0xff] }
  0x5d   : > { %774 = vmatpush.msra.mxu1 %v1964_v55  ;;  %827 = vmatpush.msra.mxu2 %v2915_v12  ;;  %v189_v55 = vld [vmem:[#allocation2 + $0xd8] sm:$0xff] }
  0x5e   : > { %884 = vmatpush.msra.mxu3 %v1979_v13  ;;  %569 = vmatmul.f32.vlgmr.msrb.gmra.mxu1 %v2111_v34 }
  0x5f   : > { %738 = vmatpush.msra.mxu0 %v2054_v36  ;;  %776 = vmatpush.msra.mxu1 %v1979_v13  ;;  %v2292_v13 = vand.u32 4294901760, %v191_v23  ;;  %v185_v36 = vld [vmem:[#allocation2 + $0xb8] sm:$0xff] }
  0x60   : > { %831 = vmatpush.msra.mxu2 %v2916_v59  ;;  %886 = vmatpush.msra.mxu3 %v1992_v8 }
  0x61   : > { %741 = vmatpush.msra.mxu0 %v2071_v47  ;;  %778 = vmatpush.msra.mxu1 %v1992_v8  ;;  %v2919_v8 = vand.u32 4294901760, %v2071_v47  ;;  %v2312_v47 = vsub.f32 %v191_v23, %v2292_v13 }
  0x62   : > { %835 = vmatpush.msra.mxu2 %v2917_v33  ;;  %888 = vmatpush.msra.mxu3 %v2005_v51 }
  0x63   : > { %744 = vmatpush.msra.mxu0 %v2083_v6  ;;  %780 = vmatpush.msra.mxu1 %v2005_v51  ;;  %v2920_v51 = vand.u32 4294901760, %v2083_v6  ;;  %v183_v6 = vld [vmem:[#allocation2 + $0xa8] sm:$0xff] }
  0x64   : > { %839 = vmatpush.msra.mxu2 %v2918_v32  ;;  %890 = vmatpush.msra.mxu3 %v2012_v61 }
  0x65   : > { %747 = vmatpush.msra.mxu0 %v2096_v49  ;;  %782 = vmatpush.msra.mxu1 %v2012_v61  ;;  %v2299_v61 = vand.u32 4294901760, %v189_v55 }
  0x66   : > { %843 = vmatpush.msra.mxu2 %v2919_v8  ;;  %892 = vmatpush.msra.mxu3 %v2027_v27  ;;  %v167_v8 = vld [vmem:[#allocation2 + $0x28] sm:$0xff] }
  0x67   : > { %750 = vmatpush.msra.mxu0 %v2109_v43  ;;  %784 = vmatpush.msra.mxu1 %v2027_v27  ;;  %v187_v27 = vld [vmem:[#allocation2 + $0xc8] sm:$0xff]  ;;  %v181_v43 = vld [vmem:[#allocation2 + $0x98] sm:$0xff] }
  0x68   : > { %847 = vmatpush.msra.mxu2 %v2920_v51  ;;  %894 = vmatpush.msra.mxu3 %v2048_v38 }
  0x69   : > { %753 = vmatpush.msra.mxu0 %v2124_v14  ;;  %786 = vmatpush.msra.mxu1 %v2048_v38  ;;  %v2302_v38 = vsub.f32 %v193_v24, %v2285_v39  ;;  %v2323_v14 = vsub.f32 %v189_v55, %v2299_v61  ;;  %v2852_v24 = vand.u32 4294901760, %v2392_v50  ;;  %v2420_v55 = vand.u32 4294901760, %v169_v44 }
  0x6a   : > { %851 = vmatpush.msra.mxu2 %v2921_v57  ;;  %896 = vmatpush.msra.mxu3 %v2061_v31  ;;  %v2423_v57 = vsub.f32 %v173_v52, %v2398_v0 }
  0x6b   : > { %756 = vmatpush.msra.mxu0 %v2148_v16  ;;  %788 = vmatpush.msra.mxu1 %v2061_v31  ;;  %v2309_v31 = vand.u32 4294901760, %v187_v27  ;;  %v2864_v49 = vand.u32 4294901760, %v2302_v38  ;;  %v179_v16 = vld [vmem:[#allocation2 + $0x88] sm:$0xff] }
  0x6c   : > { %855 = vmatpush.msra.mxu2 %v682_v21  ;;  %898 = vmatpush.msra.mxu3 %v2073_v18  ;;  %v2862_v21 = vand.u32 4294901760, %v2312_v47  ;;  %v2853_v52 = vand.u32 4294901760, %v2423_v57 }
  0x6d   : > { %759 = vmatpush.msra.mxu0 %v2163_v22  ;;  %790 = vmatpush.msra.mxu1 %v2073_v18  ;;  %v2319_v18 = vand.u32 4294901760, %v185_v36  ;;  %v2344_v22 = vand.u32 4294901760, %v181_v43 }
  0x6e   : > { %859 = vmatpush.msra.mxu2 %v688_v29  ;;  %900 = vmatpush.msra.mxu3 %v2085_v45  ;;  %v2334_v29 = vsub.f32 %v187_v27, %v2309_v31 }
  0x6f   : > { %762 = vmatpush.msra.mxu0 %v2177_v53  ;;  %792 = vmatpush.msra.mxu1 %v2085_v45  ;;  %v2330_v45 = vand.u32 4294901760, %v183_v6  ;;  %v2348_v19 = vsub.f32 %v185_v36, %v2319_v18  ;;  %v2357_v53 = vand.u32 4294901760, %v179_v16  ;;  %v2374_v28 = vsub.f32 %v181_v43, %v2344_v22  ;;  %v165_v36 = vld [vmem:[#allocation2 + $0x18] sm:$0xff] }
  0x70   : > { %863 = vmatpush.msra.mxu2 %v694_v40  ;;  %902 = vmatpush.msra.mxu3 %v2098_v48  ;;  %v2861_v40 = vand.u32 4294901760, %v2323_v14  ;;  %v2859_v20 = vand.u32 4294901760, %v2334_v29 }
  0x71   : > { %765 = vmatmul.f32.vlgmr.msra.gmra.mxu0 %v2203_v4  ;;  %794 = vmatpush.msra.mxu1 %v2098_v48  ;;  %v958_v48 = vsub.f32 %v2302_v38, %v2864_v49  ;;  %v2387_v54 = vsub.f32 %v179_v16, %v2357_v53  ;;  %v2855_v63 = vand.u32 4294901760, %v2374_v28  ;;  %v2432_v16 = vand.u32 4294901760, %v167_v8 }
  0x72   : > { %915 = vmatpush.msrb.mxu0 %v2285_v39  ;;  %867 = vmatpush.msra.mxu2 %v700_v9  ;;  %v2361_v9 = vsub.f32 %v183_v6, %v2330_v45  ;;  %v970_v3 = vsub.f32 %v2323_v14, %v2861_v40  ;;  %v976_v42 = vsub.f32 %v2334_v29, %v2859_v20 }
  0x73   : > { %904 = vmatpush.msra.mxu3 %v2121_v7  ;;  %796 = vmatpush.msra.mxu1 %v2121_v7  ;;  %v964_v7 = vsub.f32 %v2312_v47, %v2862_v21  ;;  %v959_v2 = vand.u32 4294901760, %v958_v48  ;;  %v2854_v32 = vand.u32 4294901760, %v2387_v54  ;;  %v994_v51 = vsub.f32 %v2374_v28, %v2855_v63 }
  0x74   : > { %917 = vmatpush.msrb.mxu0 %v2292_v13  ;;  %871 = vmatpush.msra.mxu2 %v706_v10  ;;  %v2858_v10 = vand.u32 4294901760, %v2348_v19  ;;  %v2856_v5 = vand.u32 4294901760, %v2361_v9  ;;  %v971_v56 = vand.u32 4294901760, %v970_v3  ;;  %v977_v12 = vand.u32 4294901760, %v976_v42 }
  0x75   : > { %906 = vmatpush.msra.mxu3 %v2137_v15  ;;  %873 = vmatmul.f32.vlgmr.msra.gmra.mxu2 %v2183_v37  ;;  %v965_v35 = vand.u32 4294901760, %v964_v7  ;;  %v1000_v43 = vsub.f32 %v2387_v54, %v2854_v32  ;;  %v1006_v7 = vsub.f32 %v2392_v50, %v2852_v24  ;;  %v2443_v3 = vand.u32 4294901760, %v165_v36  ;;  %v219_v24 = vld [vmem:[#allocation2 + $0x1c8] sm:$0xff] }
  0x76   : > { %919 = vmatpush.msrb.mxu0 %v2299_v61  ;;  %1058 = vmatpush.msrb.mxu2 %v2302_v38  ;;  %v982_v58 = vsub.f32 %v2348_v19, %v2858_v10  ;;  %v988_v59 = vsub.f32 %v2361_v9, %v2856_v5  ;;  %v217_v5 = vld [vmem:[#allocation2 + $0x1b8] sm:$0xff] }
  0x77   : > { %798 = vmatpush.msra.mxu1 %v2137_v15  ;;  %908 = vmatpush.msra.mxu3 %v2153_v46  ;;  %v2378_v15 = vand.u32 4294901760, %v175_v62  ;;  %v2505_v20 = vand.u32 4294901760, %v217_v5 }
  0x78   : > { %910 = vmatmul.f32.vlgmr.msra.gmra.mxu3 %v2183_v37  ;;  %921 = vmatpush.msrb.mxu0 %v2309_v31  ;;  %v983_v23 = vand.u32 4294901760, %v982_v58  ;;  %v989_v6 = vand.u32 4294901760, %v988_v59  ;;  %v1001_v58 = vand.u32 4294901760, %v1000_v43  ;;  %v2461_v59 = vsub.f32 %v167_v8, %v2432_v16 }
  0x79   : > { %1061 = vmatpush.msrb.mxu2 %v2312_v47  ;;  %1111 = vmatpush.msrb.mxu3 %v2285_v39  ;;  %v2404_v26 = vsub.f32 %v175_v62, %v2378_v15  ;;  %v163_v62 = vld [vmem:[#allocation2 + $0x8] sm:$0xff]  ;;  %v2924_v37 = vand.u32 4294901760, %v2302_v38 }
  0x7a   : > { %800 = vmatpush.msra.mxu1 %v2153_v46  ;;  %923 = vmatpush.msrb.mxu0 %v2319_v18  ;;  %v171_v46 = vld [vmem:[#allocation2 + $0x48] sm:$0xff] }
  0x7b   : > { %804 = vmatmul.f32.vlgmr.msra.gmra.mxu1 %v2218_v41  ;;  %1064 = vmatpush.msrb.mxu2 %v2323_v14  ;;  %v2410_v33 = vand.u32 4294901760, %v171_v46  ;;  %v2851_v27 = vand.u32 4294901760, %v2404_v26 }
  0x7c   : > { %960 = vmatpush.msrb.mxu1 %v959_v2  ;;  %1113 = vmatpush.msrb.mxu3 %v2292_v13  ;;  %v995_v2 = vand.u32 4294901760, %v994_v51  ;;  %v221_v51 = vld [vmem:[#allocation2 + $0x1d8] sm:$0xff] }
  0x7d   : > { %925 = vmatpush.msrb.mxu0 %v2330_v45  ;;  %1067 = vmatpush.msrb.mxu2 %v2334_v29  ;;  %v2435_v48 = vsub.f32 %v171_v46, %v2410_v33  ;;  %v1012_v42 = vsub.f32 %v2404_v26, %v2851_v27  ;;  %v2454_v46 = vand.u32 4294901760, %v225_v17  ;;  %v2471_v27 = vsub.f32 %v165_v36, %v2443_v3 }
  0x7e   : > { %966 = vmatpush.msrb.mxu1 %v965_v35  ;;  %1115 = vmatpush.msrb.mxu3 %v2299_v61  ;;  %v2447_v35 = vsub.f32 %v169_v44, %v2420_v55  ;;  %v2863_v36 = vand.u32 4294901760, %v2461_v59  ;;  %v2488_v63 = vand.u32 4294901760, %v221_v51 }
  0x7f   : > { %927 = vmatpush.msrb.mxu0 %v2344_v22  ;;  %1070 = vmatpush.msrb.mxu2 %v2348_v19  ;;  %v2857_v44 = vand.u32 4294901760, %v2435_v48 }
  0x80   : > { %972 = vmatpush.msrb.mxu1 %v971_v56  ;;  %1117 = vmatpush.msrb.mxu3 %v2309_v31  ;;  %v223_v56 = vld [vmem:[#allocation2 + $0x1e8] sm:$0xff]  ;;  %v2860_v43 = vand.u32 4294901760, %v2447_v35  ;;  %v2513_v40 = vsub.f32 %v221_v51, %v2488_v63 }
  0x81   : > { %929 = vmatpush.msrb.mxu0 %v2357_v53  ;;  %1073 = vmatpush.msrb.mxu2 %v2361_v9  ;;  %v2473_v8 = vand.u32 4294901760, %v223_v56 }
  0x82   : > { %978 = vmatpush.msrb.mxu1 %v977_v12  ;;  %1119 = vmatpush.msrb.mxu3 %v2319_v18  ;;  %v2457_v12 = vand.u32 4294901760, %v163_v62 }
  0x83   : > { %931 = vmatpush.msrb.mxu0 %v2365_v25  ;;  %1076 = vmatpush.msrb.mxu2 %v2374_v28  ;;  %2923 = vst [vmem:[#allocation12_spill] sm:$0xff] %v2473_v8 }
  0x84   : > { %984 = vmatpush.msrb.mxu1 %v983_v23  ;;  %1121 = vmatpush.msrb.mxu3 %v2330_v45  ;;  %2922 = vst [vmem:[#allocation5_spill] sm:$0xff] %v2457_v12  ;;  %v1007_v23 = vand.u32 4294901760, %v1006_v7  ;;  %v1013_v7 = vand.u32 4294901760, %v1012_v42  ;;  %v2486_v32 = vsub.f32 %v163_v62, %v2457_v12  ;;  %v2865_v62 = vand.u32 4294901760, %v2471_v27 }
  0x85   : > { %933 = vmatpush.msrb.mxu0 %v2378_v15  ;;  %1079 = vmatpush.msrb.mxu2 %v2387_v54 }
  0x86   : > { %990 = vmatpush.msrb.mxu1 %v989_v6  ;;  %1123 = vmatpush.msrb.mxu3 %v2344_v22  ;;  %v1018_v6 = vsub.f32 %v2423_v57, %v2853_v52  ;;  %v1024_v52 = vsub.f32 %v2435_v48, %v2857_v44  ;;  %v2500_v44 = vsub.f32 %v223_v56, %v2473_v8  ;;  %v2871_v56 = vand.u32 4294901760, %v2486_v32 }
  0x87   : > { %935 = vmatpush.msrb.mxu0 %v2398_v0  ;;  %1082 = vmatpush.msrb.mxu2 %v2392_v50 }
  0x88   : > { %996 = vmatpush.msrb.mxu1 %v995_v2  ;;  %1125 = vmatpush.msrb.mxu3 %v2357_v53  ;;  %v2478_v2 = vsub.f32 %v225_v17, %v2454_v46  ;;  %v2492_v17 = vand.u32 4294901760, %v219_v24  ;;  %v1019_v42 = vand.u32 4294901760, %v1018_v6  ;;  %v1025_v6 = vand.u32 4294901760, %v1024_v52 }
  0x89   : > { %937 = vmatpush.msrb.mxu0 %v2410_v33  ;;  %1085 = vmatpush.msrb.mxu2 %v2404_v26  ;;  %v1048_v49 = vsub.f32 %v2486_v32, %v2871_v56 }
  0x8a   : > { %1002 = vmatpush.msrb.mxu1 %v1001_v58  ;;  %1127 = vmatpush.msrb.mxu3 %v2365_v25  ;;  %v1030_v58 = vsub.f32 %v2447_v35, %v2860_v43  ;;  %v2870_v10 = vand.u32 4294901760, %v2478_v2  ;;  %v1036_v43 = vsub.f32 %v2461_v59, %v2863_v36  ;;  %v2518_v21 = vsub.f32 %v219_v24, %v2492_v17 }
  0x8b   : > { %939 = vmatpush.msrb.mxu0 %v2420_v55  ;;  %1088 = vmatpush.msrb.mxu2 %v2423_v57  ;;  %v1042_v36 = vsub.f32 %v2471_v27, %v2865_v62 }
  0x8c   : > { %1008 = vmatpush.msrb.mxu1 %v1007_v23  ;;  %1129 = vmatpush.msrb.mxu3 %v2378_v15  ;;  %v215_v23 = vld [vmem:[#allocation2 + $0x1a8] sm:$0xff]  ;;  %v1031_v52 = vand.u32 4294901760, %v1030_v58  ;;  %v1299_v24 = vsub.f32 %v2478_v2, %v2870_v10  ;;  %v1037_v62 = vand.u32 4294901760, %v1036_v43  ;;  %v209_v10 = vld [vmem:[#allocation2 + $0x178] sm:$0xff] }
  0x8d   : > { %941 = vmatpush.msrb.mxu0 %v2432_v16  ;;  %1091 = vmatpush.msrb.mxu2 %v2435_v48  ;;  %v2525_v51 = vand.u32 4294901760, %v215_v23  ;;  %v211_v58 = vld [vmem:[#allocation2 + $0x188] sm:$0xff]  ;;  %v1043_v43 = vand.u32 4294901760, %v1042_v36  ;;  %v1049_v36 = vand.u32 4294901760, %v1048_v49  ;;  %v2566_v60 = vand.u32 4294901760, %v209_v10 }
  0x8e   : > { %1014 = vmatpush.msrb.mxu1 %v1013_v7  ;;  %1131 = vmatpush.msrb.mxu3 %v2398_v0  ;;  %v213_v7 = vld [vmem:[#allocation2 + $0x198] sm:$0xff]  ;;  %v2553_v11 = vand.u32 4294901760, %v211_v58  ;;  %v1300_v38 = vand.u32 4294901760, %v1299_v24  ;;  %v2929_v24 = vand.u32 4294901760, %v2518_v21 }
  0x8f   : > { %943 = vmatpush.msrb.mxu0 %v2443_v3  ;;  %1094 = vmatpush.msrb.mxu2 %v2447_v35  ;;  %v2540_v4 = vand.u32 4294901760, %v213_v7  ;;  %v2551_v41 = vsub.f32 %v215_v23, %v2525_v51 }
  0x90   : > { %1020 = vmatpush.msrb.mxu1 %v1019_v42  ;;  %1133 = vmatpush.msrb.mxu3 %v2410_v33  ;;  %v2533_v42 = vsub.f32 %v217_v5, %v2505_v20  ;;  %v207_v5 = vld [vmem:[#allocation2 + $0x168] sm:$0xff] }
  0x91   : > { %945 = vmatpush.msrb.mxu0 %v2457_v12  ;;  %1097 = vmatpush.msrb.mxu2 %v2461_v59  ;;  %v2564_v34 = vsub.f32 %v213_v7, %v2540_v4  ;;  %v2577_v7 = vsub.f32 %v211_v58, %v2553_v11  ;;  %v2589_v58 = vsub.f32 %v209_v10, %v2566_v60 }
  0x92   : > { %1026 = vmatpush.msrb.mxu1 %v1025_v6  ;;  %1135 = vmatpush.msrb.mxu3 %v2420_v55  ;;  %v2925_v6 = vand.u32 4294901760, %v2500_v44 }
  0x93   : > { %1152 = vmatpush.msra.mxu0 %v2924_v37  ;;  %1100 = vmatpush.msrb.mxu2 %v2471_v27  ;;  %v2926_v37 = vand.u32 4294901760, %v2312_v47  ;;  %v2928_v47 = vand.u32 4294901760, %v2323_v14  ;;  %v2930_v14 = vand.u32 4294901760, %v2334_v29  ;;  %v2932_v29 = vand.u32 4294901760, %v2348_v19 }
  0x94   : > { %1032 = vmatpush.msrb.mxu1 %v1031_v52  ;;  %1137 = vmatpush.msrb.mxu3 %v2432_v16  ;;  %v1305_v56 = vsub.f32 %v2500_v44, %v2925_v6  ;;  %v2927_v6 = vand.u32 4294901760, %v2513_v40  ;;  %v2579_v52 = vand.u32 4294901760, %v207_v5  ;;  %v2934_v19 = vand.u32 4294901760, %v2361_v9 }
  0x95   : > { %1156 = vmatpush.msra.mxu0 %v2926_v37  ;;  %1103 = vmatpush.msrb.mxu2 %v2486_v32  ;;  %v205_v37 = vld [vmem:[#allocation2 + $0x158] sm:$0xff]  ;;  %v2935_v9 = vand.u32 4294901760, %v2374_v28 }
  0x96   : > { %1038 = vmatpush.msrb.mxu1 %v1037_v62  ;;  %1139 = vmatpush.msrb.mxu3 %v2443_v3  ;;  %v1311_v23 = vsub.f32 %v2513_v40, %v2927_v6  ;;  %v1317_v62 = vsub.f32 %v2518_v21, %v2929_v24  ;;  %v1306_v49 = vand.u32 4294901760, %v1305_v56  ;;  %v2879_v6 = vand.u32 4294901760, %v2564_v34 }
  0x97   : > { %1160 = vmatpush.msra.mxu0 %v2928_v47  ;;  %1256 = vmatpush.msra.mxu2 %v2454_v46  ;;  %v2931_v47 = vand.u32 4294901760, %v2533_v42  ;;  %v2602_v10 = vsub.f32 %v207_v5, %v2579_v52 }
  0x98   : > { %1044 = vmatpush.msrb.mxu1 %v1043_v43  ;;  %1141 = vmatpush.msrb.mxu3 %v2457_v12  ;;  %v203_v43 = vld [vmem:[#allocation2 + $0x148] sm:$0xff]  ;;  %v1312_v56 = vand.u32 4294901760, %v1311_v23  ;;  %v2591_v12 = vand.u32 4294901760, %v205_v37  ;;  %v1340_v23 = vand.u32 4294901760, %v2577_v7 }
  0x99   : > { %1164 = vmatpush.msra.mxu0 %v2930_v14  ;;  %1258 = vmatpush.msra.mxu2 %v2473_v8  ;;  %v1323_v24 = vsub.f32 %v2533_v42, %v2931_v47  ;;  %v1318_v14 = vand.u32 4294901760, %v1317_v62  ;;  %v201_v8 = vld [vmem:[#allocation2 + $0x138] sm:$0xff]  ;;  %v2604_v47 = vand.u32 4294901760, %v203_v43  ;;  %v1335_v62 = vsub.f32 %v2564_v34, %v2879_v6 }
  0x9a   : > { %1301 = vmatpush.msra.mxu3 %v1300_v38  ;;  %1050 = vmatpush.msrb.mxu1 %v1049_v36  ;;  %v2933_v38 = vand.u32 4294901760, %v2551_v41  ;;  %v2615_v5 = vsub.f32 %v205_v37, %v2591_v12  ;;  %v2936_v6 = vand.u32 4294901760, %v2387_v54  ;;  %v2937_v54 = vand.u32 4294901760, %v2392_v50 }
  0x9b   : > { %1168 = vmatpush.msra.mxu0 %v2932_v29  ;;  %1260 = vmatpush.msra.mxu2 %v2488_v63  ;;  %v2617_v29 = vand.u32 4294901760, %v201_v8  ;;  %v2628_v37 = vsub.f32 %v203_v43, %v2604_v47  ;;  %v1336_v28 = vand.u32 4294901760, %v1335_v62 }
  0x9c   : > { %1219 = vmatpush.msra.mxu1 %v2285_v39  ;;  %1307 = vmatpush.msra.mxu3 %v1306_v49  ;;  %v1329_v36 = vsub.f32 %v2551_v41, %v2933_v38  ;;  %v1324_v39 = vand.u32 4294901760, %v1323_v24  ;;  %v1346_v49 = vand.u32 4294901760, %v2589_v58  ;;  %v199_v38 = vld [vmem:[#allocation2 + $0x128] sm:$0xff]  ;;  %v1341_v24 = vsub.f32 %v2577_v7, %v1340_v23 }
  0x9d   : > { %1172 = vmatpush.msra.mxu0 %v2934_v19  ;;  %1262 = vmatpush.msra.mxu2 %v2492_v17  ;;  %v197_v19 = vld [vmem:[#allocation2 + $0x118] sm:$0xff]  ;;  %v2641_v43 = vsub.f32 %v201_v8, %v2617_v29  ;;  %v2938_v8 = vand.u32 4294901760, %v2404_v26  ;;  %v2939_v26 = vand.u32 4294901760, %v2423_v57 }
  0x9e   : > { %1221 = vmatpush.msra.mxu1 %v2292_v13  ;;  %1313 = vmatpush.msra.mxu3 %v1312_v56  ;;  %v1330_v13 = vand.u32 4294901760, %v1329_v36  ;;  %v1352_v56 = vand.u32 4294901760, %v2602_v10  ;;  %v1358_v36 = vand.u32 4294901760, %v2615_v5 }
  0x9f   : > { %1176 = vmatpush.msra.mxu0 %v2935_v9  ;;  %1264 = vmatpush.msra.mxu2 %v2505_v20  ;;  %v1364_v9 = vand.u32 4294901760, %v2628_v37 }
  0xa0   : > { %1223 = vmatpush.msra.mxu1 %v2299_v61  ;;  %1319 = vmatpush.msra.mxu3 %v1318_v14  ;;  %v2633_v61 = vand.u32 4294901760, %v199_v38  ;;  %v1347_v14 = vsub.f32 %v2589_v58, %v1346_v49  ;;  %v1353_v62 = vsub.f32 %v2602_v10, %v1352_v56 }
  0xa1   : > { %1180 = vmatpush.msra.mxu0 %v2936_v6  ;;  %1266 = vmatpush.msra.mxu2 %v2525_v51  ;;  %v195_v6 = vld [vmem:[#allocation2 + $0x108] sm:$0xff] }
  0xa2   : > { %1225 = vmatpush.msra.mxu1 %v2309_v31  ;;  %1325 = vmatpush.msra.mxu3 %v1324_v39  ;;  %v2646_v31 = vand.u32 4294901760, %v197_v19  ;;  %v1342_v39 = vand.u32 4294901760, %v1341_v24  ;;  %v1348_v50 = vand.u32 4294901760, %v1347_v14  ;;  %v1370_v24 = vand.u32 4294901760, %v2641_v43 }
  0xa3   : > { %1184 = vmatpush.msra.mxu0 %v2937_v54  ;;  %1268 = vmatpush.msra.mxu2 %v2540_v4  ;;  %v2664_v54 = vand.u32 4294901760, %v195_v6  ;;  %v2940_v14 = vand.u32 4294901760, %v2435_v48 }
  0xa4   : > { %1227 = vmatpush.msra.mxu1 %v2319_v18  ;;  %1331 = vmatpush.msra.mxu3 %v1330_v13  ;;  %v2657_v18 = vsub.f32 %v199_v38, %v2633_v61  ;;  %v1359_v13 = vsub.f32 %v2615_v5, %v1358_v36  ;;  %v1354_v38 = vand.u32 4294901760, %v1353_v62  ;;  %v2941_v62 = vand.u32 4294901760, %v2447_v35 }
  0xa5   : > { %1188 = vmatpush.msra.mxu0 %v2938_v8  ;;  %1270 = vmatpush.msra.mxu2 %v2553_v11  ;;  %v2942_v8 = vand.u32 4294901760, %v2461_v59 }
  0xa6   : > { %1229 = vmatpush.msra.mxu1 %v2330_v45  ;;  %1337 = vmatpush.msra.mxu3 %v1336_v28  ;;  %v2670_v45 = vsub.f32 %v197_v19, %v2646_v31  ;;  %v1365_v28 = vsub.f32 %v2628_v37, %v1364_v9  ;;  %v1376_v57 = vand.u32 4294901760, %v2657_v18  ;;  %v1371_v19 = vsub.f32 %v2641_v43, %v1370_v24 }
  0xa7   : > { %1192 = vmatpush.msra.mxu0 %v2939_v26  ;;  %1272 = vmatpush.msra.mxu2 %v2566_v60  ;;  %v2952_v26 = vld [vmem:[#allocation11_spill] sm:$0xff] }
  0xa8   : > { %1231 = vmatpush.msra.mxu1 %v2344_v22  ;;  %1343 = vmatpush.msra.mxu3 %v1342_v39  ;;  %v1360_v22 = vand.u32 4294901760, %v1359_v13  ;;  %v2685_v39 = vsub.f32 %v195_v6, %v2664_v54  ;;  %v1366_v48 = vand.u32 4294901760, %v1365_v28  ;;  %v1377_v6 = vsub.f32 %v2657_v18, %v1376_v57 }
  0xa9   : > { %1196 = vmatpush.msra.mxu0 %v2940_v14  ;;  %1274 = vmatpush.msra.mxu2 %v2579_v52  ;;  %v1372_v35 = vand.u32 4294901760, %v1371_v19 }
  0xaa   : > { %1233 = vmatpush.msra.mxu1 %v2357_v53  ;;  %1349 = vmatpush.msra.mxu3 %v1348_v50  ;;  %v1382_v53 = vand.u32 4294901760, %v2670_v45  ;;  %v2943_v50 = vand.u32 4294901760, %v2471_v27  ;;  %v1378_v13 = vand.u32 4294901760, %v1377_v6 }
  0xab   : > { %1200 = vmatpush.msra.mxu0 %v2941_v62  ;;  %1276 = vmatpush.msra.mxu2 %v2591_v12 }
  0xac   : > { %1235 = vmatpush.msra.mxu1 %v2365_v25  ;;  %1355 = vmatpush.msra.mxu3 %v1354_v38  ;;  %v1388_v25 = vand.u32 4294901760, %v2685_v39  ;;  %v1383_v59 = vsub.f32 %v2670_v45, %v1382_v53  ;;  %v2954_v38 = vld [vmem:[#allocation8_spill] sm:$0xff] }
  0xad   : > { %1204 = vmatpush.msra.mxu0 %v2942_v8  ;;  %1278 = vmatpush.msra.mxu2 %v2604_v47 }
  0xae   : > { %1237 = vmatpush.msra.mxu1 %v2378_v15  ;;  %1361 = vmatpush.msra.mxu3 %v1360_v22  ;;  %v2944_v15 = vand.u32 4294901760, %v2486_v32  ;;  %v1384_v27 = vand.u32 4294901760, %v1383_v59  ;;  %v2945_v32 = vld [vmem:[#allocation7_spill] sm:$0xff] }
  0xaf   : > { %1208 = vmatpush.msra.mxu0 %v2943_v50  ;;  %1280 = vmatpush.msra.mxu2 %v2617_v29 }
  0xb0   : > { %1239 = vmatpush.msra.mxu1 %v2398_v0  ;;  %1367 = vmatpush.msra.mxu3 %v1366_v48  ;;  %v1389_v0 = vsub.f32 %v2685_v39, %v1388_v25 }
  0xb1   : > { %1212 = vmatpush.msra.mxu0 %v2944_v15  ;;  %1282 = vmatpush.msra.mxu2 %v2633_v61 }
  0xb2   : > { %1241 = vmatpush.msra.mxu1 %v2410_v33  ;;  %1373 = vmatpush.msra.mxu3 %v1372_v35  ;;  %v1390_v33 = vand.u32 4294901760, %v1389_v0 }
  0xb3   : > { %951 = vmatmul.f32.vlgmr.msrb.gmra.mxu0 %v2197_v30  ;;  %1284 = vmatpush.msra.mxu2 %v2646_v31  ;;  %v2946_v30 = vand.u32 4294901760, %v2478_v2 }
  0xb4   : > { %1243 = vmatpush.msra.mxu1 %v2420_v55  ;;  %1399 = vmatpush.msrb.mxu0 %v2478_v2  ;;  %v2947_v55 = vld [vmem:[#allocation6_spill] sm:$0xff]  ;;  %v2950_v2 = vand.u32 4294901760, %v2513_v40 }
  0xb5   : > { %1379 = vmatpush.msra.mxu3 %v1378_v13  ;;  %1106 = vmatmul.f32.vlgmr.msrb.gmra.mxu2 %v2135_v1  ;;  %v2948_v1 = vand.u32 4294901760, %v2500_v44 }
  0xb6   : > { %1402 = vmatpush.msrb.mxu0 %v2500_v44  ;;  %1245 = vmatpush.msra.mxu1 %v2432_v16  ;;  %v2949_v16 = vld [vmem:[#allocation5_spill] sm:$0xff]  ;;  %v2953_v44 = vand.u32 4294901760, %v2518_v21 }
  0xb7   : > { %1286 = vmatpush.msra.mxu2 %v2664_v54  ;;  %1385 = vmatpush.msra.mxu3 %v1384_v27 }
  0xb8   : > { %1145 = vmatmul.f32.vlgmr.msrb.gmra.mxu3 %v2945_v32  ;;  %1405 = vmatpush.msrb.mxu0 %v2513_v40  ;;  %v2955_v40 = vand.u32 4294901760, %v2533_v42 }
  0xb9   : > { %1493 = vmatpush.msrb.mxu2 %v2946_v30  ;;  %1247 = vmatpush.msra.mxu1 %v2443_v3  ;;  %v2951_v3 = vld [vmem:[#allocation12_spill] sm:$0xff] }
  0xba   : > { %1391 = vmatpush.msra.mxu3 %v1390_v33  ;;  %1052 = vmatmul.f32.vlgmr.msrb.gmra.mxu1 %v2947_v55 }
  0xbb   : > { %1408 = vmatpush.msrb.mxu0 %v2518_v21  ;;  %1497 = vmatpush.msrb.mxu2 %v2948_v1  ;;  %v2956_v21 = vand.u32 4294901760, %v2551_v41 }
  0xbc   : > { %1560 = vmatpush.msrb.mxu3 %v2454_v46  ;;  %1249 = vmatpush.msra.mxu1 %v2949_v16 }
  0xbd   : > { %1411 = vmatpush.msrb.mxu0 %v2533_v42  ;;  %1501 = vmatpush.msrb.mxu2 %v2950_v2 }
  0xbe   : > { %1452 = vmatpush.msrb.mxu1 %v2454_v46  ;;  %1562 = vmatpush.msrb.mxu3 %v2951_v3 }
  0xbf   : > { %1292 = vmatmul.f32.vlgmr.msra.gmra.mxu2 %v2952_v26  ;;  %1414 = vmatpush.msrb.mxu0 %v2551_v41 }
  0xc0   : > { %1454 = vmatpush.msrb.mxu1 %v2951_v3  ;;  %1505 = vmatpush.msrb.mxu2 %v2953_v44 }
  0xc1   : > { %1564 = vmatpush.msrb.mxu3 %v2488_v63  ;;  %1214 = vmatmul.f32.vlgmr.msra.gmra.mxu0 %v2947_v55 }
  0xc2   : > { %1393 = vmatmul.f32.vlgmr.msra.gmra.mxu3 %v2954_v38  ;;  %1417 = vmatpush.msrb.mxu0 %v2564_v34 }
  0xc3   : > { %1456 = vmatpush.msrb.mxu1 %v2488_v63  ;;  %1509 = vmatpush.msrb.mxu2 %v2955_v40  ;;  %v2957_v63 = vand.u32 4294901760, %v2564_v34  ;;  %v2958_v34 = vld [vmem:[#allocation9_spill] sm:$0xff] }
  0xc4   : > { %1566 = vmatpush.msrb.mxu3 %v2492_v17  ;;  %1251 = vmatmul.f32.vlgmr.msra.gmra.mxu1 %v2947_v55 }
  0xc5   : > { %1420 = vmatpush.msrb.mxu0 %v2577_v7  ;;  %1458 = vmatpush.msrb.mxu1 %v2492_v17 }
  0xc6   : > { %1513 = vmatpush.msrb.mxu2 %v2956_v21  ;;  %1568 = vmatpush.msrb.mxu3 %v2505_v20 }
  0xc7   : > { %1423 = vmatpush.msrb.mxu0 %v2589_v58  ;;  %1460 = vmatpush.msrb.mxu1 %v2505_v20 }
  0xc8   : > { %1517 = vmatpush.msrb.mxu2 %v2957_v63  ;;  %1570 = vmatpush.msrb.mxu3 %v2525_v51 }
  0xc9   : > { %1426 = vmatpush.msrb.mxu0 %v2602_v10  ;;  %1462 = vmatpush.msrb.mxu1 %v2525_v51 }
  0xca   : > { %1521 = vmatpush.msrb.mxu2 %v1340_v23  ;;  %1572 = vmatpush.msrb.mxu3 %v2540_v4 }
  0xcb   : > { %1429 = vmatpush.msrb.mxu0 %v2615_v5  ;;  %1464 = vmatpush.msrb.mxu1 %v2540_v4  ;;  %v270_v4 = vpop.f32.mrf.mxu0 }
  0xcc   : > { %1525 = vmatpush.msrb.mxu2 %v1346_v49  ;;  %1574 = vmatpush.msrb.mxu3 %v2553_v11 }
  0xcd   : > { %1432 = vmatpush.msrb.mxu0 %v2628_v37  ;;  %1466 = vmatpush.msrb.mxu1 %v2553_v11  ;;  %v2959_v11 = vld [vmem:[#allocation10_spill] sm:$0xff] }
  0xce   : > { %1529 = vmatpush.msrb.mxu2 %v1352_v56  ;;  %1576 = vmatpush.msrb.mxu3 %v2566_v60 }
  0xcf   : > { %1435 = vmatpush.msrb.mxu0 %v2641_v43  ;;  %1468 = vmatpush.msrb.mxu1 %v2566_v60 }
  0xd0   : > { %1533 = vmatpush.msrb.mxu2 %v1358_v36  ;;  %1578 = vmatpush.msrb.mxu3 %v2579_v52 }
  0xd1   : > { %1438 = vmatpush.msrb.mxu0 %v2657_v18  ;;  %1470 = vmatpush.msrb.mxu1 %v2579_v52  ;;  %v371_v60 = vpop.f32.mrf.mxu1 }
  0xd2   : > { %1537 = vmatpush.msrb.mxu2 %v1364_v9  ;;  %1580 = vmatpush.msrb.mxu3 %v2591_v12  ;;  %v372_v41 = vadd.f32 %v371_v60, %v270_v4 }
  0xd3   : > { %1441 = vmatpush.msrb.mxu0 %v2670_v45  ;;  %1472 = vmatpush.msrb.mxu1 %v2591_v12  ;;  %v425_v20 = vpop.f32.mrf.mxu2  ;;  %v464_v12 = vpop.f32.mrf.mxu3 }
  0xd4   : > { %1541 = vmatpush.msrb.mxu2 %v1370_v24  ;;  %1582 = vmatpush.msrb.mxu3 %v2604_v47  ;;  %v426_v46 = vadd.f32 %v425_v20, %v372_v41 }
  0xd5   : > { %1444 = vmatpush.msrb.mxu0 %v2685_v39  ;;  %1474 = vmatpush.msrb.mxu1 %v2604_v47 }
  0xd6   : > { %1545 = vmatpush.msrb.mxu2 %v1376_v57  ;;  %1584 = vmatpush.msrb.mxu3 %v2617_v29  ;;  %v465_v17 = vadd.f32 %v464_v12, %v426_v46 }
  0xd7   : > { %1447 = vmatmul.f32.vlgmr.msrb.gmra.mxu0 %v2958_v34  ;;  %1476 = vmatpush.msrb.mxu1 %v2617_v29 }
  0xd8   : > { %1549 = vmatpush.msrb.mxu2 %v1382_v53  ;;  %1586 = vmatpush.msrb.mxu3 %v2633_v61  ;;  %v533_v51 = vpop.f32.mrf.mxu0 }
  0xd9   : > { %1478 = vmatpush.msrb.mxu1 %v2633_v61  ;;  %v534_v42 = vadd.f32 %v533_v51, %v465_v17 }
  0xda   : > { %1553 = vmatpush.msrb.mxu2 %v1388_v25  ;;  %1588 = vmatpush.msrb.mxu3 %v2646_v31 }
  0xdb   : > { %1555 = vmatmul.f32.vlgmr.msrb.gmra.mxu2 %v2954_v38  ;;  %1480 = vmatpush.msrb.mxu1 %v2646_v31  ;;  %v570_v52 = vpop.f32.mrf.mxu1 }
  0xdc   : > { %1590 = vmatpush.msrb.mxu3 %v2664_v54  ;;  %v571_v7 = vadd.f32 %v570_v52, %v534_v42  ;;  %v611_v58 = vpop.f32.mrf.mxu2 }
  0xdd   : > { %1592 = vmatmul.f32.vlgmr.msrb.gmra.mxu3 %v2954_v38  ;;  %1482 = vmatpush.msrb.mxu1 %v2664_v54 }
  0xde   : > { %1486 = vmatmul.f32.vlgmr.msrb.gmra.mxu1 %v2959_v11  ;;  %v612_v23 = vadd.f32 %v611_v58, %v571_v7 }
  0xdf   : > { %v712_v10 = vpop.f32.mrf.mxu3 }
  0xe0   : > { %v713_v49 = vadd.f32 %v712_v10, %v612_v23 }
  0xee   : > { %v766_v47 = vpop.f32.mrf.mxu0 }
  0xef   : > { %v767_v5 = vadd.f32 %v766_v47, %v713_v49 }
  0xf8   : > { %v805_v29 = vpop.f32.mrf.mxu1  ;;  %v874_v56 = vpop.f32.mrf.mxu2 }
  0xf9   : > { %v806_v37 = vadd.f32 %v805_v29, %v767_v5 }
  0xfb   : > { %v875_v61 = vadd.f32 %v874_v56, %v806_v37  ;;  %v911_v36 = vpop.f32.mrf.mxu3 }
  0xfd   : > { %v912_v43 = vadd.f32 %v911_v36, %v875_v61 }
  0xff   : > { %1599 = vrot.lane.b32.xlu0 %v912_v43, %s1764_s26  ;;  %1597 = vst.msk [vmem:[%s2816_s25] sm:$0xf] %vm1596_vm0, %v912_v43 }
 0x130   : > { %v952_v9 = vpop.f32.mrf.mxu0 }
 0x137   : > { %v1053_v31 = vpop.f32.mrf.mxu1 }
 0x138   : > { %v1054_v18 = vadd.f32 %v1053_v31, %v952_v9  ;;  %v1107_v24 = vpop.f32.mrf.mxu2 }
 0x13a   : > { %v1108_v54 = vadd.f32 %v1107_v24, %v1054_v18 }
 0x13b   : > { %v1146_v45 = vpop.f32.mrf.mxu3 }
 0x13c   : > { %v1147_v28 = vadd.f32 %v1146_v45, %v1108_v54 }
 0x13e   : > { %v1215_v14 = vpop.f32.mrf.mxu0 }
 0x13f   : > { %v1216_v57 = vadd.f32 %v1215_v14, %v1147_v28 }
 0x141   : > { %v1252_v22 = vpop.f32.mrf.mxu1 }
 0x142   : > { %v1253_v19 = vadd.f32 %v1252_v22, %v1216_v57  ;;  %v1293_v39 = vpop.f32.mrf.mxu2 }
 0x144   : > { %v1294_v62 = vadd.f32 %v1293_v39, %v1253_v19 }
 0x145   : > { %v1394_v53 = vpop.f32.mrf.mxu3 }
 0x146   : > { %v1395_v8 = vadd.f32 %v1394_v53, %v1294_v62 }
 0x154   : > { %v1448_v48 = vpop.f32.mrf.mxu0 }
 0x155   : > { %v1449_v6 = vadd.f32 %v1448_v48, %v1395_v8 }
 0x15b   : > { %v1487_v35 = vpop.f32.mrf.mxu1 }
 0x15c   : > { %v1488_v25 = vadd.f32 %v1487_v35, %v1449_v6 }
 0x15e   : > { %v1556_v50 = vpop.f32.mrf.mxu2 }
 0x15f   : > { %v1557_v59 = vadd.f32 %v1556_v50, %v1488_v25 }
 0x160   : > { %v1593_v15 = vpop.f32.mrf.mxu3 }
 0x161   : > { %v1594_v13 = vadd.f32 %v1593_v15, %v1557_v59 }
 0x163   : > { %1607 = vrot.lane.b32.xlu0 %v1594_v13, %s1764_s26  ;;  %1691 = vst.msk [vmem:[%s2816_s25 + $0x8] sm:$0xf] %vm1596_vm0, %v1594_v13 }
 0x171   : > { %v1600_v0 = vpop.permute.xlu0 %1599 }
 0x172   : > { %1690 = vst.msk [vmem:[%s2816_s25 + $0x4] sm:$0xf] %vm1596_vm0, %v1600_v0 }
 0x1d5   : > { %v1608_v27 = vpop.permute.xlu0 %1607 }
 0x1d6   : > { %1692 = vst.msk [vmem:[%s2816_s25 + $0xc] sm:$0xf] %vm1596_vm0, %v1608_v27 }
 0x1d7 PF: > { %s13_s9 = sadd.s32 1, %s1759_s9  }
 0x1d8   : > { %p10_p7 = scmp.ge.s32.totalorder %s13_s9, 4  }
 0x1da   :  { %12 = sbr.rel (!%p10_p7) target bundleno = 1 (0x1), region = 66 }
 0x1df   :  { %1633 = vsyncpa [#allocation3], 1 }
 0x1e0   :  { %1635 = vsyncpa [#allocation3 + $0x1], 1 }

</bundles_post_ra>
